<compile_context>
chip_gen: v7x
topology: tpu7x:2x2x1
jax: 0.10.0
libtpu: 0.0.40
codegen_flags: <defaults>
</compile_context>

<pallas_src>
import functools

import jax
import jax.numpy as jnp
from jax.experimental import pallas as pl
from jax.experimental.pallas import tpu as pltpu


def _round_up(x, m):
    return ((x + m - 1) // m) * m


def _adder_kernel(w_ref, x_ref, o_ref, acc_ref, *, block_k):
    # w_ref:   (TF, TK)  weight tile for this (F-tile, K-block)
    # x_ref:   (TK, TP)  unfolded-input tile for this (K-block, P-tile)
    # o_ref:   (TF, TP)  output tile (written on the last K step)
    # acc_ref: (TF, TP)  f32 VMEM accumulator, persists across the K grid axis
    ki = pl.program_id(2)

    @pl.when(ki == 0)
    def _init():
        acc_ref[...] = jnp.zeros_like(acc_ref)

    acc = acc_ref[...]
    # Fully unrolled reduction over this K block: each step lane-broadcasts
    # one weight column (TF, 1) against a sublane-broadcast input row (1, TP)
    # -> 3 VPU ops (sub/abs/add) per output element.  No (F, K, TP) cube is
    # ever materialized; live data is acc + a couple of (TF, TP) temps.
    for j in range(block_k):
        acc = acc + jnp.abs(w_ref[:, j:j + 1] - x_ref[j:j + 1, :])
    acc_ref[...] = acc

    @pl.when(ki == pl.num_programs(2) - 1)
    def _finalize():
        o_ref[...] = (-acc_ref[...]).astype(o_ref.dtype)


def _adder_l1_matmul(w_col, x_col, *, tile_f=64, tile_p=256):
    """out[f, p] = -sum_k |w_col[f,k] - x_col[k,p]| via a tiled Pallas kernel."""
    F, K = w_col.shape
    K2, P = x_col.shape
    assert K == K2

    # ---- tile sizes ------------------------------------------------------
    f_pad = _round_up(F, 8)
    tf = min(tile_f, f_pad)              # F tile (sublane dim of the output)
    f_pad = _round_up(f_pad, tf)

    p_pad = _round_up(P, 128)
    tp = min(tile_p, p_pad)              # P tile (lane dim, multiple of 128)
    p_pad = _round_up(p_pad, tp)

    k8 = _round_up(K, 8)
    if k8 <= 256:
        tk = k8                          # full K resident, single reduction step
    else:
        tk = 128                         # lane-aligned K blocks, grid-reduced
    k_pad = _round_up(k8, tk)

    # Zero-pad both operands along K so padded positions contribute |0-0| = 0;
    # padded F rows / P columns are garbage and sliced off after the call.
    w_p = jnp.zeros((f_pad, k_pad), jnp.float32).at[:F, :K].set(w_col)
    x_p = jnp.zeros((k_pad, p_pad), jnp.float32).at[:K, :P].set(x_col)

    grid = (f_pad // tf, p_pad // tp, k_pad // tk)

    out = pl.pallas_call(
        functools.partial(_adder_kernel, block_k=tk),
        out_shape=jax.ShapeDtypeStruct((f_pad, p_pad), jnp.float32),
        grid_spec=pltpu.PrefetchScalarGridSpec(
            num_scalar_prefetch=0,
            grid=grid,
            in_specs=[
                pl.BlockSpec((tf, tk), lambda fi, pi, ki: (fi, ki)),   # W tile
                pl.BlockSpec((tk, tp), lambda fi, pi, ki: (ki, pi)),   # X tile
            ],
            out_specs=pl.BlockSpec((tf, tp), lambda fi, pi, ki: (fi, pi)),
            scratch_shapes=[pltpu.VMEM((tf, tp), jnp.float32)],        # acc
        ),
        compiler_params=pltpu.CompilerParams(
            dimension_semantics=("parallel", "parallel", "arbitrary"),
            vmem_limit_bytes=32 * 1024 * 1024,
        ),
    )(w_p, x_p)
    return out[:F, :P]


def _im2col(x, kh, kw, stride, padding):
    """Unfold NCHW x into (N, C*kh*kw, h_out*w_out), matching torch unfold."""
    n, c, h, w = x.shape
    h_out = (h - kh + 2 * padding) // stride + 1
    w_out = (w - kw + 2 * padding) // stride + 1
    xp = jnp.pad(x, ((0, 0), (0, 0), (padding, padding), (padding, padding)))
    rows = []
    for i in range(kh):
        cols = []
        for j in range(kw):
            sl = jax.lax.slice(
                xp,
                (0, 0, i, j),
                (n, c, i + (h_out - 1) * stride + 1, j + (w_out - 1) * stride + 1),
                (1, 1, stride, stride),
            )  # (n, c, h_out, w_out)
            cols.append(sl)
        rows.append(jnp.stack(cols, axis=2))          # (n, c, kw, h_out, w_out)
    patches = jnp.stack(rows, axis=2)                  # (n, c, kh, kw, h_out, w_out)
    return patches.reshape(n, c * kh * kw, h_out * w_out), h_out, w_out


@functools.partial(jax.jit, static_argnames=("stride", "padding"))
def adder2d_forward(x, w, b=None, *, stride=1, padding=0):
    """AdderNet 2D forward. x: (N, C, H, W) NCHW, w: (F, C, kh, kw)."""
    n, c, h, w_in = x.shape
    f, _, kh, kw = w.shape

    x_col_ncl, h_out, w_out = _im2col(x, kh, kw, stride, padding)   # (N, K, L)
    # match torch: permute(1,2,0).view(K, L*N)  -> column index = l*N + n
    K = c * kh * kw
    x_col = jnp.transpose(x_col_ncl, (1, 2, 0)).reshape(K, h_out * w_out * n)
    w_col = w.reshape(f, K)

    out = _adder_l1_matmul(w_col.astype(jnp.float32),
                           x_col.astype(jnp.float32))                # (F, L*N)
    out = out.reshape(f, h_out, w_out, n)
    out = jnp.transpose(out, (3, 0, 1, 2))                           # (N, F, h_out, w_out)
    if b is not None:
        out = out + b[None, :, None, None]
    return out


class Adder2d:
    """JAX mirror of the PyTorch adder2d module (deterministic init)."""

    def __init__(self, input_channel, output_channel, kernel_size,
                 stride=1, padding=0, bias=False, key=jax.random.PRNGKey(0)):
        self.stride = stride
        self.padding = padding
        k_w, k_b = jax.random.split(key)
        # nn.init.normal_ defaults: mean=0, std=1
        self.adder = jax.random.normal(
            k_w, (output_channel, input_channel, kernel_size, kernel_size),
            dtype=jnp.float32)
        self.bias = bias
        if bias:
            # nn.init.uniform_ defaults: U[0, 1)
            self.b = jax.random.uniform(k_b, (output_channel,), dtype=jnp.float32)
        else:
            self.b = None

    def __call__(self, x):
        return adder2d_forward(x, self.adder, self.b,
                               stride=self.stride, padding=self.padding)


def _reference(x, w, stride, padding):
    """Pure-JAX reference for correctness check."""
    n, c, h, w_in = x.shape
    f, _, kh, kw = w.shape
    x_col_ncl, h_out, w_out = _im2col(x, kh, kw, stride, padding)
    K = c * kh * kw
    x_col = jnp.transpose(x_col_ncl, (1, 2, 0)).reshape(K, h_out * w_out * n)
    w_col = w.reshape(f, K)
    out = -jnp.sum(jnp.abs(w_col[:, :, None] - x_col[None, :, :]), axis=1)
    out = out.reshape(f, h_out, w_out, n)
    return jnp.transpose(out, (3, 0, 1, 2))


if __name__ == "__main__":
    key = jax.random.PRNGKey(0)
    k_x, k_m = jax.random.split(key)

    N, C, H, W = 2, 4, 16, 16
    F, KSZ, STRIDE, PAD = 8, 3, 1, 1

    x = jax.random.normal(k_x, (N, C, H, W), dtype=jnp.float32)
    module = Adder2d(C, F, KSZ, stride=STRIDE, padding=PAD, bias=False, key=k_m)

    out = module(x)
    out = jax.block_until_ready(out)

    ref = _reference(x, module.adder, STRIDE, PAD)
    assert out.shape == (N, F, H, W), out.shape
    assert jnp.allclose(out, ref, atol=1e-4, rtol=1e-4), \
        float(jnp.max(jnp.abs(out - ref)))

    print("KERNEL_OK")
</pallas_src>

<mosaic_0001>
module attributes {stable_mosaic.version = 11 : i64} {
  func.func @_adder_kernel(%arg0: i32, %arg1: i32, %arg2: i32, %arg3: memref<8x40xf32, #tpu.memory_space<vmem>>, %arg4: memref<40x256xf32, #tpu.memory_space<vmem>>, %arg5: memref<8x256xf32, #tpu.memory_space<vmem>>, %arg6: memref<8x256xf32, #tpu.memory_space<vmem>>) attributes {dimension_semantics = [#tpu.dimension_semantics<parallel>, #tpu.dimension_semantics<parallel>, #tpu.dimension_semantics<arbitrary>], iteration_bounds = array<i64: 1, 2, 1>, scalar_prefetch = 0 : i64, scratch_operands = 1 : i64, tpu.core_type = #tpu.core_type<tc>, window_params = [{transform_indices = @transform_0, window_bounds = array<i64: 8, 40>}, {transform_indices = @transform_1, window_bounds = array<i64: 40, 256>}, {transform_indices = @transform_2, window_bounds = array<i64: 8, 256>}]} {
    %c0_i32 = arith.constant 0 : i32
    %0 = arith.cmpi eq, %arg2, %c0_i32 : i32
    %1 = arith.extui %0 : i1 to i32
    %c0_i32_0 = arith.constant 0 : i32
    %2 = arith.cmpi ne, %1, %c0_i32_0 : i32
    scf.if %2 {
      %cst = arith.constant 0.000000e+00 : f32
      %288 = vector.broadcast %cst : f32 to vector<8x256xf32>
      %c0_127 = arith.constant 0 : index
      %c0_128 = arith.constant 0 : index
      %289 = vector.load %arg6[%c0_127, %c0_128] : memref<8x256xf32, #tpu.memory_space<vmem>>, vector<8x256xf32>
      tpu.vector_store %arg6[%c0_127, %c0_128], %288 {strides = array<i32>} : memref<8x256xf32, #tpu.memory_space<vmem>>, vector<8x256xf32>,
    } else {
    }
    %c0 = arith.constant 0 : index
    %c0_1 = arith.constant 0 : index
    %3 = vector.load %arg6[%c0, %c0_1] : memref<8x256xf32, #tpu.memory_space<vmem>>, vector<8x256xf32>
    %c0_2 = arith.constant 0 : index
    %c0_3 = arith.constant 0 : index
    %4 = vector.load %arg3[%c0_2, %c0_3] : memref<8x40xf32, #tpu.memory_space<vmem>>, vector<8x1xf32>
    %c0_4 = arith.constant 0 : index
    %c0_5 = arith.constant 0 : index
    %5 = vector.load %arg4[%c0_4, %c0_5] : memref<40x256xf32, #tpu.memory_space<vmem>>, vector<1x256xf32>
    %6 = vector.broadcast %4 : vector<8x1xf32> to vector<8x256xf32>
    %7 = vector.broadcast %5 : vector<1x256xf32> to vector<8x256xf32>
    %8 = arith.subf %6, %7 : vector<8x256xf32>
    %9 = math.absf %8 : vector<8x256xf32>
    %10 = arith.addf %3, %9 : vector<8x256xf32>
    %c0_6 = arith.constant 0 : index
    %c1 = arith.constant 1 : index
    %11 = vector.load %arg3[%c0_6, %c1] : memref<8x40xf32, #tpu.memory_space<vmem>>, vector<8x1xf32>
    %c1_7 = arith.constant 1 : index
    %c0_8 = arith.constant 0 : index
    %12 = vector.load %arg4[%c1_7, %c0_8] : memref<40x256xf32, #tpu.memory_space<vmem>>, vector<1x256xf32>
    %13 = vector.broadcast %11 : vector<8x1xf32> to vector<8x256xf32>
    %14 = vector.broadcast %12 : vector<1x256xf32> to vector<8x256xf32>
    %15 = arith.subf %13, %14 : vector<8x256xf32>
    %16 = math.absf %15 : vector<8x256xf32>
    %17 = arith.addf %10, %16 : vector<8x256xf32>
    %c0_9 = arith.constant 0 : index
    %c2 = arith.constant 2 : index
    %18 = vector.load %arg3[%c0_9, %c2] : memref<8x40xf32, #tpu.memory_space<vmem>>, vector<8x1xf32>
    %c2_10 = arith.constant 2 : index
    %c0_11 = arith.constant 0 : index
    %19 = vector.load %arg4[%c2_10, %c0_11] : memref<40x256xf32, #tpu.memory_space<vmem>>, vector<1x256xf32>
    %20 = vector.broadcast %18 : vector<8x1xf32> to vector<8x256xf32>
    %21 = vector.broadcast %19 : vector<1x256xf32> to vector<8x256xf32>
    %22 = arith.subf %20, %21 : vector<8x256xf32>
    %23 = math.absf %22 : vector<8x256xf32>
    %24 = arith.addf %17, %23 : vector<8x256xf32>
    %c0_12 = arith.constant 0 : index
    %c3 = arith.constant 3 : index
    %25 = vector.load %arg3[%c0_12, %c3] : memref<8x40xf32, #tpu.memory_space<vmem>>, vector<8x1xf32>
    %c3_13 = arith.constant 3 : index
    %c0_14 = arith.constant 0 : index
    %26 = vector.load %arg4[%c3_13, %c0_14] : memref<40x256xf32, #tpu.memory_space<vmem>>, vector<1x256xf32>
    %27 = vector.broadcast %25 : vector<8x1xf32> to vector<8x256xf32>
    %28 = vector.broadcast %26 : vector<1x256xf32> to vector<8x256xf32>
    %29 = arith.subf %27, %28 : vector<8x256xf32>
    %30 = math.absf %29 : vector<8x256xf32>
    %31 = arith.addf %24, %30 : vector<8x256xf32>
    %c0_15 = arith.constant 0 : index
    %c4 = arith.constant 4 : index
    %32 = vector.load %arg3[%c0_15, %c4] : memref<8x40xf32, #tpu.memory_space<vmem>>, vector<8x1xf32>
    %c4_16 = arith.constant 4 : index
    %c0_17 = arith.constant 0 : index
    %33 = vector.load %arg4[%c4_16, %c0_17] : memref<40x256xf32, #tpu.memory_space<vmem>>, vector<1x256xf32>
    %34 = vector.broadcast %32 : vector<8x1xf32> to vector<8x256xf32>
    %35 = vector.broadcast %33 : vector<1x256xf32> to vector<8x256xf32>
    %36 = arith.subf %34, %35 : vector<8x256xf32>
    %37 = math.absf %36 : vector<8x256xf32>
    %38 = arith.addf %31, %37 : vector<8x256xf32>
    %c0_18 = arith.constant 0 : index
    %c5 = arith.constant 5 : index
    %39 = vector.load %arg3[%c0_18, %c5] : memref<8x40xf32, #tpu.memory_space<vmem>>, vector<8x1xf32>
    %c5_19 = arith.constant 5 : index
    %c0_20 = arith.constant 0 : index
    %40 = vector.load %arg4[%c5_19, %c0_20] : memref<40x256xf32, #tpu.memory_space<vmem>>, vector<1x256xf32>
    %41 = vector.broadcast %39 : vector<8x1xf32> to vector<8x256xf32>
    %42 = vector.broadcast %40 : vector<1x256xf32> to vector<8x256xf32>
    %43 = arith.subf %41, %42 : vector<8x256xf32>
    %44 = math.absf %43 : vector<8x256xf32>
    %45 = arith.addf %38, %44 : vector<8x256xf32>
    %c0_21 = arith.constant 0 : index
    %c6 = arith.constant 6 : index
    %46 = vector.load %arg3[%c0_21, %c6] : memref<8x40xf32, #tpu.memory_space<vmem>>, vector<8x1xf32>
    %c6_22 = arith.constant 6 : index
    %c0_23 = arith.constant 0 : index
    %47 = vector.load %arg4[%c6_22, %c0_23] : memref<40x256xf32, #tpu.memory_space<vmem>>, vector<1x256xf32>
    %48 = vector.broadcast %46 : vector<8x1xf32> to vector<8x256xf32>
    %49 = vector.broadcast %47 : vector<1x256xf32> to vector<8x256xf32>
    %50 = arith.subf %48, %49 : vector<8x256xf32>
    %51 = math.absf %50 : vector<8x256xf32>
    %52 = arith.addf %45, %51 : vector<8x256xf32>
    %c0_24 = arith.constant 0 : index
    %c7 = arith.constant 7 : index
    %53 = vector.load %arg3[%c0_24, %c7] : memref<8x40xf32, #tpu.memory_space<vmem>>, vector<8x1xf32>
    %c7_25 = arith.constant 7 : index
    %c0_26 = arith.constant 0 : index
    %54 = vector.load %arg4[%c7_25, %c0_26] : memref<40x256xf32, #tpu.memory_space<vmem>>, vector<1x256xf32>
    %55 = vector.broadcast %53 : vector<8x1xf32> to vector<8x256xf32>
    %56 = vector.broadcast %54 : vector<1x256xf32> to vector<8x256xf32>
    %57 = arith.subf %55, %56 : vector<8x256xf32>
    %58 = math.absf %57 : vector<8x256xf32>
    %59 = arith.addf %52, %58 : vector<8x256xf32>
    %c0_27 = arith.constant 0 : index
    %c8 = arith.constant 8 : index
    %60 = vector.load %arg3[%c0_27, %c8] : memref<8x40xf32, #tpu.memory_space<vmem>>, vector<8x1xf32>
    %c8_28 = arith.constant 8 : index
    %c0_29 = arith.constant 0 : index
    %61 = vector.load %arg4[%c8_28, %c0_29] : memref<40x256xf32, #tpu.memory_space<vmem>>, vector<1x256xf32>
    %62 = vector.broadcast %60 : vector<8x1xf32> to vector<8x256xf32>
    %63 = vector.broadcast %61 : vector<1x256xf32> to vector<8x256xf32>
    %64 = arith.subf %62, %63 : vector<8x256xf32>
    %65 = math.absf %64 : vector<8x256xf32>
    %66 = arith.addf %59, %65 : vector<8x256xf32>
    %c0_30 = arith.constant 0 : index
    %c9 = arith.constant 9 : index
    %67 = vector.load %arg3[%c0_30, %c9] : memref<8x40xf32, #tpu.memory_space<vmem>>, vector<8x1xf32>
    %c9_31 = arith.constant 9 : index
    %c0_32 = arith.constant 0 : index
    %68 = vector.load %arg4[%c9_31, %c0_32] : memref<40x256xf32, #tpu.memory_space<vmem>>, vector<1x256xf32>
    %69 = vector.broadcast %67 : vector<8x1xf32> to vector<8x256xf32>
    %70 = vector.broadcast %68 : vector<1x256xf32> to vector<8x256xf32>
    %71 = arith.subf %69, %70 : vector<8x256xf32>
    %72 = math.absf %71 : vector<8x256xf32>
    %73 = arith.addf %66, %72 : vector<8x256xf32>
    %c0_33 = arith.constant 0 : index
    %c10 = arith.constant 10 : index
    %74 = vector.load %arg3[%c0_33, %c10] : memref<8x40xf32, #tpu.memory_space<vmem>>, vector<8x1xf32>
    %c10_34 = arith.constant 10 : index
    %c0_35 = arith.constant 0 : index
    %75 = vector.load %arg4[%c10_34, %c0_35] : memref<40x256xf32, #tpu.memory_space<vmem>>, vector<1x256xf32>
    %76 = vector.broadcast %74 : vector<8x1xf32> to vector<8x256xf32>
    %77 = vector.broadcast %75 : vector<1x256xf32> to vector<8x256xf32>
    %78 = arith.subf %76, %77 : vector<8x256xf32>
    %79 = math.absf %78 : vector<8x256xf32>
    %80 = arith.addf %73, %79 : vector<8x256xf32>
    %c0_36 = arith.constant 0 : index
    %c11 = arith.constant 11 : index
    %81 = vector.load %arg3[%c0_36, %c11] : memref<8x40xf32, #tpu.memory_space<vmem>>, vector<8x1xf32>
    %c11_37 = arith.constant 11 : index
    %c0_38 = arith.constant 0 : index
    %82 = vector.load %arg4[%c11_37, %c0_38] : memref<40x256xf32, #tpu.memory_space<vmem>>, vector<1x256xf32>
    %83 = vector.broadcast %81 : vector<8x1xf32> to vector<8x256xf32>
    %84 = vector.broadcast %82 : vector<1x256xf32> to vector<8x256xf32>
    %85 = arith.subf %83, %84 : vector<8x256xf32>
    %86 = math.absf %85 : vector<8x256xf32>
    %87 = arith.addf %80, %86 : vector<8x256xf32>
    %c0_39 = arith.constant 0 : index
    %c12 = arith.constant 12 : index
    %88 = vector.load %arg3[%c0_39, %c12] : memref<8x40xf32, #tpu.memory_space<vmem>>, vector<8x1xf32>
    %c12_40 = arith.constant 12 : index
    %c0_41 = arith.constant 0 : index
    %89 = vector.load %arg4[%c12_40, %c0_41] : memref<40x256xf32, #tpu.memory_space<vmem>>, vector<1x256xf32>
    %90 = vector.broadcast %88 : vector<8x1xf32> to vector<8x256xf32>
    %91 = vector.broadcast %89 : vector<1x256xf32> to vector<8x256xf32>
    %92 = arith.subf %90, %91 : vector<8x256xf32>
    %93 = math.absf %92 : vector<8x256xf32>
    %94 = arith.addf %87, %93 : vector<8x256xf32>
    %c0_42 = arith.constant 0 : index
    %c13 = arith.constant 13 : index
    %95 = vector.load %arg3[%c0_42, %c13] : memref<8x40xf32, #tpu.memory_space<vmem>>, vector<8x1xf32>
    %c13_43 = arith.constant 13 : index
    %c0_44 = arith.constant 0 : index
    %96 = vector.load %arg4[%c13_43, %c0_44] : memref<40x256xf32, #tpu.memory_space<vmem>>, vector<1x256xf32>
    %97 = vector.broadcast %95 : vector<8x1xf32> to vector<8x256xf32>
    %98 = vector.broadcast %96 : vector<1x256xf32> to vector<8x256xf32>
    %99 = arith.subf %97, %98 : vector<8x256xf32>
    %100 = math.absf %99 : vector<8x256xf32>
    %101 = arith.addf %94, %100 : vector<8x256xf32>
    %c0_45 = arith.constant 0 : index
    %c14 = arith.constant 14 : index
    %102 = vector.load %arg3[%c0_45, %c14] : memref<8x40xf32, #tpu.memory_space<vmem>>, vector<8x1xf32>
    %c14_46 = arith.constant 14 : index
    %c0_47 = arith.constant 0 : index
    %103 = vector.load %arg4[%c14_46, %c0_47] : memref<40x256xf32, #tpu.memory_space<vmem>>, vector<1x256xf32>
    %104 = vector.broadcast %102 : vector<8x1xf32> to vector<8x256xf32>
    %105 = vector.broadcast %103 : vector<1x256xf32> to vector<8x256xf32>
    %106 = arith.subf %104, %105 : vector<8x256xf32>
    %107 = math.absf %106 : vector<8x256xf32>
    %108 = arith.addf %101, %107 : vector<8x256xf32>
    %c0_48 = arith.constant 0 : index
    %c15 = arith.constant 15 : index
    %109 = vector.load %arg3[%c0_48, %c15] : memref<8x40xf32, #tpu.memory_space<vmem>>, vector<8x1xf32>
    %c15_49 = arith.constant 15 : index
    %c0_50 = arith.constant 0 : index
    %110 = vector.load %arg4[%c15_49, %c0_50] : memref<40x256xf32, #tpu.memory_space<vmem>>, vector<1x256xf32>
    %111 = vector.broadcast %109 : vector<8x1xf32> to vector<8x256xf32>
    %112 = vector.broadcast %110 : vector<1x256xf32> to vector<8x256xf32>
    %113 = arith.subf %111, %112 : vector<8x256xf32>
    %114 = math.absf %113 : vector<8x256xf32>
    %115 = arith.addf %108, %114 : vector<8x256xf32>
    %c0_51 = arith.constant 0 : index
    %c16 = arith.constant 16 : index
    %116 = vector.load %arg3[%c0_51, %c16] : memref<8x40xf32, #tpu.memory_space<vmem>>, vector<8x1xf32>
    %c16_52 = arith.constant 16 : index
    %c0_53 = arith.constant 0 : index
    %117 = vector.load %arg4[%c16_52, %c0_53] : memref<40x256xf32, #tpu.memory_space<vmem>>, vector<1x256xf32>
    %118 = vector.broadcast %116 : vector<8x1xf32> to vector<8x256xf32>
    %119 = vector.broadcast %117 : vector<1x256xf32> to vector<8x256xf32>
    %120 = arith.subf %118, %119 : vector<8x256xf32>
    %121 = math.absf %120 : vector<8x256xf32>
    %122 = arith.addf %115, %121 : vector<8x256xf32>
    %c0_54 = arith.constant 0 : index
    %c17 = arith.constant 17 : index
    %123 = vector.load %arg3[%c0_54, %c17] : memref<8x40xf32, #tpu.memory_space<vmem>>, vector<8x1xf32>
    %c17_55 = arith.constant 17 : index
    %c0_56 = arith.constant 0 : index
    %124 = vector.load %arg4[%c17_55, %c0_56] : memref<40x256xf32, #tpu.memory_space<vmem>>, vector<1x256xf32>
    %125 = vector.broadcast %123 : vector<8x1xf32> to vector<8x256xf32>
    %126 = vector.broadcast %124 : vector<1x256xf32> to vector<8x256xf32>
    %127 = arith.subf %125, %126 : vector<8x256xf32>
    %128 = math.absf %127 : vector<8x256xf32>
    %129 = arith.addf %122, %128 : vector<8x256xf32>
    %c0_57 = arith.constant 0 : index
    %c18 = arith.constant 18 : index
    %130 = vector.load %arg3[%c0_57, %c18] : memref<8x40xf32, #tpu.memory_space<vmem>>, vector<8x1xf32>
    %c18_58 = arith.constant 18 : index
    %c0_59 = arith.constant 0 : index
    %131 = vector.load %arg4[%c18_58, %c0_59] : memref<40x256xf32, #tpu.memory_space<vmem>>, vector<1x256xf32>
    %132 = vector.broadcast %130 : vector<8x1xf32> to vector<8x256xf32>
    %133 = vector.broadcast %131 : vector<1x256xf32> to vector<8x256xf32>
    %134 = arith.subf %132, %133 : vector<8x256xf32>
    %135 = math.absf %134 : vector<8x256xf32>
    %136 = arith.addf %129, %135 : vector<8x256xf32>
    %c0_60 = arith.constant 0 : index
    %c19 = arith.constant 19 : index
    %137 = vector.load %arg3[%c0_60, %c19] : memref<8x40xf32, #tpu.memory_space<vmem>>, vector<8x1xf32>
    %c19_61 = arith.constant 19 : index
    %c0_62 = arith.constant 0 : index
    %138 = vector.load %arg4[%c19_61, %c0_62] : memref<40x256xf32, #tpu.memory_space<vmem>>, vector<1x256xf32>
    %139 = vector.broadcast %137 : vector<8x1xf32> to vector<8x256xf32>
    %140 = vector.broadcast %138 : vector<1x256xf32> to vector<8x256xf32>
    %141 = arith.subf %139, %140 : vector<8x256xf32>
    %142 = math.absf %141 : vector<8x256xf32>
    %143 = arith.addf %136, %142 : vector<8x256xf32>
    %c0_63 = arith.constant 0 : index
    %c20 = arith.constant 20 : index
    %144 = vector.load %arg3[%c0_63, %c20] : memref<8x40xf32, #tpu.memory_space<vmem>>, vector<8x1xf32>
    %c20_64 = arith.constant 20 : index
    %c0_65 = arith.constant 0 : index
    %145 = vector.load %arg4[%c20_64, %c0_65] : memref<40x256xf32, #tpu.memory_space<vmem>>, vector<1x256xf32>
    %146 = vector.broadcast %144 : vector<8x1xf32> to vector<8x256xf32>
    %147 = vector.broadcast %145 : vector<1x256xf32> to vector<8x256xf32>
    %148 = arith.subf %146, %147 : vector<8x256xf32>
    %149 = math.absf %148 : vector<8x256xf32>
    %150 = arith.addf %143, %149 : vector<8x256xf32>
    %c0_66 = arith.constant 0 : index
    %c21 = arith.constant 21 : index
    %151 = vector.load %arg3[%c0_66, %c21] : memref<8x40xf32, #tpu.memory_space<vmem>>, vector<8x1xf32>
    %c21_67 = arith.constant 21 : index
    %c0_68 = arith.constant 0 : index
    %152 = vector.load %arg4[%c21_67, %c0_68] : memref<40x256xf32, #tpu.memory_space<vmem>>, vector<1x256xf32>
    %153 = vector.broadcast %151 : vector<8x1xf32> to vector<8x256xf32>
    %154 = vector.broadcast %152 : vector<1x256xf32> to vector<8x256xf32>
    %155 = arith.subf %153, %154 : vector<8x256xf32>
    %156 = math.absf %155 : vector<8x256xf32>
    %157 = arith.addf %150, %156 : vector<8x256xf32>
    %c0_69 = arith.constant 0 : index
    %c22 = arith.constant 22 : index
    %158 = vector.load %arg3[%c0_69, %c22] : memref<8x40xf32, #tpu.memory_space<vmem>>, vector<8x1xf32>
    %c22_70 = arith.constant 22 : index
    %c0_71 = arith.constant 0 : index
    %159 = vector.load %arg4[%c22_70, %c0_71] : memref<40x256xf32, #tpu.memory_space<vmem>>, vector<1x256xf32>
    %160 = vector.broadcast %158 : vector<8x1xf32> to vector<8x256xf32>
    %161 = vector.broadcast %159 : vector<1x256xf32> to vector<8x256xf32>
    %162 = arith.subf %160, %161 : vector<8x256xf32>
    %163 = math.absf %162 : vector<8x256xf32>
    %164 = arith.addf %157, %163 : vector<8x256xf32>
    %c0_72 = arith.constant 0 : index
    %c23 = arith.constant 23 : index
    %165 = vector.load %arg3[%c0_72, %c23] : memref<8x40xf32, #tpu.memory_space<vmem>>, vector<8x1xf32>
    %c23_73 = arith.constant 23 : index
    %c0_74 = arith.constant 0 : index
    %166 = vector.load %arg4[%c23_73, %c0_74] : memref<40x256xf32, #tpu.memory_space<vmem>>, vector<1x256xf32>
    %167 = vector.broadcast %165 : vector<8x1xf32> to vector<8x256xf32>
    %168 = vector.broadcast %166 : vector<1x256xf32> to vector<8x256xf32>
    %169 = arith.subf %167, %168 : vector<8x256xf32>
    %170 = math.absf %169 : vector<8x256xf32>
    %171 = arith.addf %164, %170 : vector<8x256xf32>
    %c0_75 = arith.constant 0 : index
    %c24 = arith.constant 24 : index
    %172 = vector.load %arg3[%c0_75, %c24] : memref<8x40xf32, #tpu.memory_space<vmem>>, vector<8x1xf32>
    %c24_76 = arith.constant 24 : index
    %c0_77 = arith.constant 0 : index
    %173 = vector.load %arg4[%c24_76, %c0_77] : memref<40x256xf32, #tpu.memory_space<vmem>>, vector<1x256xf32>
    %174 = vector.broadcast %172 : vector<8x1xf32> to vector<8x256xf32>
    %175 = vector.broadcast %173 : vector<1x256xf32> to vector<8x256xf32>
    %176 = arith.subf %174, %175 : vector<8x256xf32>
    %177 = math.absf %176 : vector<8x256xf32>
    %178 = arith.addf %171, %177 : vector<8x256xf32>
    %c0_78 = arith.constant 0 : index
    %c25 = arith.constant 25 : index
    %179 = vector.load %arg3[%c0_78, %c25] : memref<8x40xf32, #tpu.memory_space<vmem>>, vector<8x1xf32>
    %c25_79 = arith.constant 25 : index
    %c0_80 = arith.constant 0 : index
    %180 = vector.load %arg4[%c25_79, %c0_80] : memref<40x256xf32, #tpu.memory_space<vmem>>, vector<1x256xf32>
    %181 = vector.broadcast %179 : vector<8x1xf32> to vector<8x256xf32>
    %182 = vector.broadcast %180 : vector<1x256xf32> to vector<8x256xf32>
    %183 = arith.subf %181, %182 : vector<8x256xf32>
    %184 = math.absf %183 : vector<8x256xf32>
    %185 = arith.addf %178, %184 : vector<8x256xf32>
    %c0_81 = arith.constant 0 : index
    %c26 = arith.constant 26 : index
    %186 = vector.load %arg3[%c0_81, %c26] : memref<8x40xf32, #tpu.memory_space<vmem>>, vector<8x1xf32>
    %c26_82 = arith.constant 26 : index
    %c0_83 = arith.constant 0 : index
    %187 = vector.load %arg4[%c26_82, %c0_83] : memref<40x256xf32, #tpu.memory_space<vmem>>, vector<1x256xf32>
    %188 = vector.broadcast %186 : vector<8x1xf32> to vector<8x256xf32>
    %189 = vector.broadcast %187 : vector<1x256xf32> to vector<8x256xf32>
    %190 = arith.subf %188, %189 : vector<8x256xf32>
    %191 = math.absf %190 : vector<8x256xf32>
    %192 = arith.addf %185, %191 : vector<8x256xf32>
    %c0_84 = arith.constant 0 : index
    %c27 = arith.constant 27 : index
    %193 = vector.load %arg3[%c0_84, %c27] : memref<8x40xf32, #tpu.memory_space<vmem>>, vector<8x1xf32>
    %c27_85 = arith.constant 27 : index
    %c0_86 = arith.constant 0 : index
    %194 = vector.load %arg4[%c27_85, %c0_86] : memref<40x256xf32, #tpu.memory_space<vmem>>, vector<1x256xf32>
    %195 = vector.broadcast %193 : vector<8x1xf32> to vector<8x256xf32>
    %196 = vector.broadcast %194 : vector<1x256xf32> to vector<8x256xf32>
    %197 = arith.subf %195, %196 : vector<8x256xf32>
    %198 = math.absf %197 : vector<8x256xf32>
    %199 = arith.addf %192, %198 : vector<8x256xf32>
    %c0_87 = arith.constant 0 : index
    %c28 = arith.constant 28 : index
    %200 = vector.load %arg3[%c0_87, %c28] : memref<8x40xf32, #tpu.memory_space<vmem>>, vector<8x1xf32>
    %c28_88 = arith.constant 28 : index
    %c0_89 = arith.constant 0 : index
    %201 = vector.load %arg4[%c28_88, %c0_89] : memref<40x256xf32, #tpu.memory_space<vmem>>, vector<1x256xf32>
    %202 = vector.broadcast %200 : vector<8x1xf32> to vector<8x256xf32>
    %203 = vector.broadcast %201 : vector<1x256xf32> to vector<8x256xf32>
    %204 = arith.subf %202, %203 : vector<8x256xf32>
    %205 = math.absf %204 : vector<8x256xf32>
    %206 = arith.addf %199, %205 : vector<8x256xf32>
    %c0_90 = arith.constant 0 : index
    %c29 = arith.constant 29 : index
    %207 = vector.load %arg3[%c0_90, %c29] : memref<8x40xf32, #tpu.memory_space<vmem>>, vector<8x1xf32>
    %c29_91 = arith.constant 29 : index
    %c0_92 = arith.constant 0 : index
    %208 = vector.load %arg4[%c29_91, %c0_92] : memref<40x256xf32, #tpu.memory_space<vmem>>, vector<1x256xf32>
    %209 = vector.broadcast %207 : vector<8x1xf32> to vector<8x256xf32>
    %210 = vector.broadcast %208 : vector<1x256xf32> to vector<8x256xf32>
    %211 = arith.subf %209, %210 : vector<8x256xf32>
    %212 = math.absf %211 : vector<8x256xf32>
    %213 = arith.addf %206, %212 : vector<8x256xf32>
    %c0_93 = arith.constant 0 : index
    %c30 = arith.constant 30 : index
    %214 = vector.load %arg3[%c0_93, %c30] : memref<8x40xf32, #tpu.memory_space<vmem>>, vector<8x1xf32>
    %c30_94 = arith.constant 30 : index
    %c0_95 = arith.constant 0 : index
    %215 = vector.load %arg4[%c30_94, %c0_95] : memref<40x256xf32, #tpu.memory_space<vmem>>, vector<1x256xf32>
    %216 = vector.broadcast %214 : vector<8x1xf32> to vector<8x256xf32>
    %217 = vector.broadcast %215 : vector<1x256xf32> to vector<8x256xf32>
    %218 = arith.subf %216, %217 : vector<8x256xf32>
    %219 = math.absf %218 : vector<8x256xf32>
    %220 = arith.addf %213, %219 : vector<8x256xf32>
    %c0_96 = arith.constant 0 : index
    %c31 = arith.constant 31 : index
    %221 = vector.load %arg3[%c0_96, %c31] : memref<8x40xf32, #tpu.memory_space<vmem>>, vector<8x1xf32>
    %c31_97 = arith.constant 31 : index
    %c0_98 = arith.constant 0 : index
    %222 = vector.load %arg4[%c31_97, %c0_98] : memref<40x256xf32, #tpu.memory_space<vmem>>, vector<1x256xf32>
    %223 = vector.broadcast %221 : vector<8x1xf32> to vector<8x256xf32>
    %224 = vector.broadcast %222 : vector<1x256xf32> to vector<8x256xf32>
    %225 = arith.subf %223, %224 : vector<8x256xf32>
    %226 = math.absf %225 : vector<8x256xf32>
    %227 = arith.addf %220, %226 : vector<8x256xf32>
    %c0_99 = arith.constant 0 : index
    %c32 = arith.constant 32 : index
    %228 = vector.load %arg3[%c0_99, %c32] : memref<8x40xf32, #tpu.memory_space<vmem>>, vector<8x1xf32>
    %c32_100 = arith.constant 32 : index
    %c0_101 = arith.constant 0 : index
    %229 = vector.load %arg4[%c32_100, %c0_101] : memref<40x256xf32, #tpu.memory_space<vmem>>, vector<1x256xf32>
    %230 = vector.broadcast %228 : vector<8x1xf32> to vector<8x256xf32>
    %231 = vector.broadcast %229 : vector<1x256xf32> to vector<8x256xf32>
    %232 = arith.subf %230, %231 : vector<8x256xf32>
    %233 = math.absf %232 : vector<8x256xf32>
    %234 = arith.addf %227, %233 : vector<8x256xf32>
    %c0_102 = arith.constant 0 : index
    %c33 = arith.constant 33 : index
    %235 = vector.load %arg3[%c0_102, %c33] : memref<8x40xf32, #tpu.memory_space<vmem>>, vector<8x1xf32>
    %c33_103 = arith.constant 33 : index
    %c0_104 = arith.constant 0 : index
    %236 = vector.load %arg4[%c33_103, %c0_104] : memref<40x256xf32, #tpu.memory_space<vmem>>, vector<1x256xf32>
    %237 = vector.broadcast %235 : vector<8x1xf32> to vector<8x256xf32>
    %238 = vector.broadcast %236 : vector<1x256xf32> to vector<8x256xf32>
    %239 = arith.subf %237, %238 : vector<8x256xf32>
    %240 = math.absf %239 : vector<8x256xf32>
    %241 = arith.addf %234, %240 : vector<8x256xf32>
    %c0_105 = arith.constant 0 : index
    %c34 = arith.constant 34 : index
    %242 = vector.load %arg3[%c0_105, %c34] : memref<8x40xf32, #tpu.memory_space<vmem>>, vector<8x1xf32>
    %c34_106 = arith.constant 34 : index
    %c0_107 = arith.constant 0 : index
    %243 = vector.load %arg4[%c34_106, %c0_107] : memref<40x256xf32, #tpu.memory_space<vmem>>, vector<1x256xf32>
    %244 = vector.broadcast %242 : vector<8x1xf32> to vector<8x256xf32>
    %245 = vector.broadcast %243 : vector<1x256xf32> to vector<8x256xf32>
    %246 = arith.subf %244, %245 : vector<8x256xf32>
    %247 = math.absf %246 : vector<8x256xf32>
    %248 = arith.addf %241, %247 : vector<8x256xf32>
    %c0_108 = arith.constant 0 : index
    %c35 = arith.constant 35 : index
    %249 = vector.load %arg3[%c0_108, %c35] : memref<8x40xf32, #tpu.memory_space<vmem>>, vector<8x1xf32>
    %c35_109 = arith.constant 35 : index
    %c0_110 = arith.constant 0 : index
    %250 = vector.load %arg4[%c35_109, %c0_110] : memref<40x256xf32, #tpu.memory_space<vmem>>, vector<1x256xf32>
    %251 = vector.broadcast %249 : vector<8x1xf32> to vector<8x256xf32>
    %252 = vector.broadcast %250 : vector<1x256xf32> to vector<8x256xf32>
    %253 = arith.subf %251, %252 : vector<8x256xf32>
    %254 = math.absf %253 : vector<8x256xf32>
    %255 = arith.addf %248, %254 : vector<8x256xf32>
    %c0_111 = arith.constant 0 : index
    %c36 = arith.constant 36 : index
    %256 = vector.load %arg3[%c0_111, %c36] : memref<8x40xf32, #tpu.memory_space<vmem>>, vector<8x1xf32>
    %c36_112 = arith.constant 36 : index
    %c0_113 = arith.constant 0 : index
    %257 = vector.load %arg4[%c36_112, %c0_113] : memref<40x256xf32, #tpu.memory_space<vmem>>, vector<1x256xf32>
    %258 = vector.broadcast %256 : vector<8x1xf32> to vector<8x256xf32>
    %259 = vector.broadcast %257 : vector<1x256xf32> to vector<8x256xf32>
    %260 = arith.subf %258, %259 : vector<8x256xf32>
    %261 = math.absf %260 : vector<8x256xf32>
    %262 = arith.addf %255, %261 : vector<8x256xf32>
    %c0_114 = arith.constant 0 : index
    %c37 = arith.constant 37 : index
    %263 = vector.load %arg3[%c0_114, %c37] : memref<8x40xf32, #tpu.memory_space<vmem>>, vector<8x1xf32>
    %c37_115 = arith.constant 37 : index
    %c0_116 = arith.constant 0 : index
    %264 = vector.load %arg4[%c37_115, %c0_116] : memref<40x256xf32, #tpu.memory_space<vmem>>, vector<1x256xf32>
    %265 = vector.broadcast %263 : vector<8x1xf32> to vector<8x256xf32>
    %266 = vector.broadcast %264 : vector<1x256xf32> to vector<8x256xf32>
    %267 = arith.subf %265, %266 : vector<8x256xf32>
    %268 = math.absf %267 : vector<8x256xf32>
    %269 = arith.addf %262, %268 : vector<8x256xf32>
    %c0_117 = arith.constant 0 : index
    %c38 = arith.constant 38 : index
    %270 = vector.load %arg3[%c0_117, %c38] : memref<8x40xf32, #tpu.memory_space<vmem>>, vector<8x1xf32>
    %c38_118 = arith.constant 38 : index
    %c0_119 = arith.constant 0 : index
    %271 = vector.load %arg4[%c38_118, %c0_119] : memref<40x256xf32, #tpu.memory_space<vmem>>, vector<1x256xf32>
    %272 = vector.broadcast %270 : vector<8x1xf32> to vector<8x256xf32>
    %273 = vector.broadcast %271 : vector<1x256xf32> to vector<8x256xf32>
    %274 = arith.subf %272, %273 : vector<8x256xf32>
    %275 = math.absf %274 : vector<8x256xf32>
    %276 = arith.addf %269, %275 : vector<8x256xf32>
    %c0_120 = arith.constant 0 : index
    %c39 = arith.constant 39 : index
    %277 = vector.load %arg3[%c0_120, %c39] : memref<8x40xf32, #tpu.memory_space<vmem>>, vector<8x1xf32>
    %c39_121 = arith.constant 39 : index
    %c0_122 = arith.constant 0 : index
    %278 = vector.load %arg4[%c39_121, %c0_122] : memref<40x256xf32, #tpu.memory_space<vmem>>, vector<1x256xf32>
    %279 = vector.broadcast %277 : vector<8x1xf32> to vector<8x256xf32>
    %280 = vector.broadcast %278 : vector<1x256xf32> to vector<8x256xf32>
    %281 = arith.subf %279, %280 : vector<8x256xf32>
    %282 = math.absf %281 : vector<8x256xf32>
    %283 = arith.addf %276, %282 : vector<8x256xf32>
    %c0_123 = arith.constant 0 : index
    %c0_124 = arith.constant 0 : index
    %284 = vector.load %arg6[%c0_123, %c0_124] : memref<8x256xf32, #tpu.memory_space<vmem>>, vector<8x256xf32>
    tpu.vector_store %arg6[%c0_123, %c0_124], %283 {strides = array<i32>} : memref<8x256xf32, #tpu.memory_space<vmem>>, vector<8x256xf32>,
    %c0_i32_125 = arith.constant 0 : i32
    %285 = arith.cmpi eq, %arg2, %c0_i32_125 : i32
    %286 = arith.extui %285 : i1 to i32
    %c0_i32_126 = arith.constant 0 : i32
    %287 = arith.cmpi ne, %286, %c0_i32_126 : i32
    scf.if %287 {
      %c0_127 = arith.constant 0 : index
      %c0_128 = arith.constant 0 : index
      %288 = vector.load %arg6[%c0_127, %c0_128] : memref<8x256xf32, #tpu.memory_space<vmem>>, vector<8x256xf32>
      %cst = arith.constant 0.000000e+00 : f32
      %289 = vector.broadcast %cst : f32 to vector<8x256xf32>
      %290 = arith.subf %289, %288 : vector<8x256xf32>
      %c0_129 = arith.constant 0 : index
      %c0_130 = arith.constant 0 : index
      %291 = vector.load %arg5[%c0_129, %c0_130] : memref<8x256xf32, #tpu.memory_space<vmem>>, vector<8x256xf32>
      tpu.vector_store %arg5[%c0_129, %c0_130], %290 {strides = array<i32>} : memref<8x256xf32, #tpu.memory_space<vmem>>, vector<8x256xf32>,
    } else {
    }
    return
  }
  func.func @transform_0(%arg0: i32, %arg1: i32, %arg2: i32) -> (i32, i32) {
    %c0_i32 = arith.constant 0 : i32
    return %arg0, %arg2 : i32, i32
  }
  func.func @transform_1(%arg0: i32, %arg1: i32, %arg2: i32) -> (i32, i32) {
    %c0_i32 = arith.constant 0 : i32
    return %arg2, %arg1 : i32, i32
  }
  func.func @transform_2(%arg0: i32, %arg1: i32, %arg2: i32) -> (i32, i32) {
    %c0_i32 = arith.constant 0 : i32
    return %arg0, %arg1 : i32, i32
  }
}

</mosaic_0001>

<bundles_post_ra>
// kernel: adder2d_forward.1
= control target key start
LH: loop header
LB: loop body
LE: loop exit
PB: predicated region body
PF: predicated region fallthrough
CT: control target
= control target key end

     0   :  { %s1568_s9 = smov 0   ;;  %s1570_s10 = smov 0   ;;  %s1804_s0 = inlined_call_operand.vmem [shape: f32[8,40], index: 0, kind: input, shape index: {}]   ;;  %s1805_s1 = inlined_call_operand.vmem [shape: f32[40,512], index: 1, kind: input, shape index: {}]   ;;  %s1806_s2 = inlined_call_operand.vmem [shape: f32[8,512], index: 2, kind: output, shape index: {}]  }
   0x1   :  { %s1572_s11 = smov 0   ;;  %s1574_s12 = smov 0  }
   0x2   :  { %s1576_s13 = smov 0  }
   0x3 LB: > { %s27_s14 = sadd.s32 1, %s1507_s12  ;;  %p75_p1 = scmp.ne.s32.totalorder %s1499_s10, %s1495_s9  ;;  %s1511_s13 = sphi %s1576_s13, %s12_s13   ;;  %s1507_s12 = sphi %s1574_s12, %s1810_s12   ;;  %s1503_s11 = sphi %s1572_s11, %s1809_s11   ;;  %s1499_s10 = sphi %s1570_s10, %s1808_s10   ;;  %s1495_s9 = sphi %s1568_s9, %s1807_s9  }
   0x4   : > { %p29_p0 = scmp.ge.s32.totalorder %s27_s14, 2  ;;  %p76_p2 = scmp.eq.s32.totalorder %s1511_s13, 0 }
   0x5   : > { %s68_s16 = sadd.s32 1, %s1499_s10  ;;  %p1302_p5 = scmp.ge.s32.totalorder %s1511_s13, 2 }
   0x6   : > { %s1812_s14 = smov (%p29_p0, %s27_s14), 0  ;;  %p77_p3 = por %p76_p2, %p75_p1 }
   0x7   : > { %s64_s15 = ssub.s32 %s1507_s12, %s1812_s14  ;;  %139 = sbr.rel (%p1302_p5) target bundleno = 23 (0x17), region = 20 }
   0x8   : > { %p66_p4 = scmp.eq.s32.totalorder %s64_s15, 0 }
   0xa   : > { %s1603_s17 = scalar_select %p66_p4, %s1499_s10, %s68_s16  }
   0xe   : > { %142 = sbr.rel (!%p77_p3) target bundleno = 23 (0x17), region = 24  ;;  %s144_s18 = sand.u32 (%p77_p3), 1, %s1499_s10  }
   0xf   : > { %s1349_s19 = sshll.u32 (%p77_p3), %s1507_s12, 4  ;;  %s1350_s20 = smul.u32 (%p77_p3), 80, %s144_s18 }
  0x10   : > { %s152_s23 = scalar_lea.vmem (%p77_p3), %s1805_s1, %s1349_s19 }
  0x11   : > { %v165_v0 = vld [vmem:[%s152_s23] sm:$0xff] (%p77_p3)  ;;  %v167_v1 = vld [vmem:[%s152_s23 + $0x8] sm:$0xff] (%p77_p3)  ;;  %s146_s24 = scalar_lea.vmem (%p77_p3), [#allocation3], %s1350_s20 }
  0x12   : > { %v169_v2 = vld [vmem:[%s152_s23 + $0x20] sm:$0xff] (%p77_p3)  ;;  %v171_v3 = vld [vmem:[%s152_s23 + $0x28] sm:$0xff] (%p77_p3)  ;;  %166 = vst [vmem:[%s146_s24] sm:$0xff] (%p77_p3), %v165_v0  ;;  %168 = vst [vmem:[%s146_s24 + $0x8] sm:$0xff] (%p77_p3), %v167_v1 }
  0x13   : > { %v173_v4 = vld [vmem:[%s152_s23 + $0x40] sm:$0xff] (%p77_p3)  ;;  %v175_v5 = vld [vmem:[%s152_s23 + $0x48] sm:$0xff] (%p77_p3)  ;;  %170 = vst [vmem:[%s146_s24 + $0x10] sm:$0xff] (%p77_p3), %v169_v2  ;;  %172 = vst [vmem:[%s146_s24 + $0x18] sm:$0xff] (%p77_p3), %v171_v3 }
  0x14   : > { %174 = vst [vmem:[%s146_s24 + $0x20] sm:$0xff] (%p77_p3), %v173_v4  ;;  %176 = vst [vmem:[%s146_s24 + $0x28] sm:$0xff] (%p77_p3), %v175_v5  ;;  %v177_v6 = vld [vmem:[%s152_s23 + $0x60] sm:$0xff] (%p77_p3)  ;;  %v179_v7 = vld [vmem:[%s152_s23 + $0x68] sm:$0xff] (%p77_p3) }
  0x15   : > { %v181_v8 = vld [vmem:[%s152_s23 + $0x80] sm:$0xff]  ;;  %178 = vst [vmem:[%s146_s24 + $0x30] sm:$0xff] %v177_v6  ;;  %180 = vst [vmem:[%s146_s24 + $0x38] sm:$0xff] %v179_v7  ;;  %v183_v9 = vld [vmem:[%s152_s23 + $0x88] sm:$0xff] }
  0x16   : > { %182 = vst [vmem:[%s146_s24 + $0x40] sm:$0xff] %v181_v8  ;;  %184 = vst [vmem:[%s146_s24 + $0x48] sm:$0xff] %v183_v9 }
  0x17 PF: > { %p1305_p6 = scmp.ge.s32.totalorder %s1511_s13, 1  ;;  %p189_p7 = scmp.lt.s32.totalorder %s1511_s13, 3 }
  0x19   : > { %p190_p8 = pnand %p1305_p6, %p189_p7 }
  0x1a   : > { %v1616_v10 = vld [vmem:[%s1804_s0] sm:$0xff] (!%p190_p8)  ;;  %v1513_v11 = vmov (!%p190_p8), 2   ;;  %v1514_v12 = vmov (!%p190_p8), 0   ;;  %v1515_v13 = vmov (!%p190_p8), 3   ;;  %v1516_v14 = vmov (!%p190_p8), 1   ;;  %s196_s27 = sand.u32 (!%p190_p8), 1, %s1495_s9  }
  0x1b   : > { %193 = sbr.rel (%p190_p8) target bundleno = 290 (0x122), region = 47  ;;  %1434 = vset.pattern.permute.xlu1 (!%p190_p8), %v1513_v11  ;;  %1432 = vset.pattern.permute.xlu0 (!%p190_p8), %v1514_v12  ;;  %v1517_v15 = vmov (!%p190_p8), 4   ;;  %v1518_v16 = vmov (!%p190_p8), 5   ;;  %v1519_v17 = vmov (!%p190_p8), 6   ;;  %v1520_v18 = vmov (!%p190_p8), 8   ;;  %s1306_s30 = sshll.u32 (!%p190_p8), %s1503_s11, 1 }
  0x1c   : > { %305 = vperm.xlu1 (!%p190_p8), %1434, %v1616_v10   ;;  %259 = vperm.xlu0 (!%p190_p8), %1432, %v1616_v10   ;;  %v1521_v19 = vmov (!%p190_p8), 7   ;;  %v1522_v20 = vmov (!%p190_p8), 11   ;;  %v1523_v21 = vmov (!%p190_p8), 9   ;;  %v1524_v22 = vmov (!%p190_p8), 14   ;;  %s1351_s28 = smul.u32 (!%p190_p8), 80, %s196_s27  ;;  %p240_p9 = scmp.lt.s32.totalorder (!%p190_p8), %s1306_s30, 3 }
  0x1d   : > { %v1525_v23 = vmov (!%p190_p8), 10   ;;  %v1526_v24 = vmov (!%p190_p8), 17   ;;  %v1527_v25 = vmov (!%p190_p8), 12   ;;  %v1528_v26 = vmov (!%p190_p8), 20  }
  0x1e   : > { %v1529_v27 = vmov (!%p190_p8), 13   ;;  %v1530_v28 = vmov (!%p190_p8), 23   ;;  %v1531_v29 = vmov (!%p190_p8), 15   ;;  %v1532_v30 = vmov (!%p190_p8), 26   ;;  %s1658_s29 = scalar_lea.vmem (!%p190_p8), [#allocation3], %s1351_s28 }
  0x1f   : > { %v1533_v31 = vmov (!%p190_p8), 16   ;;  %v1534_v32 = vmov (!%p190_p8), 29   ;;  %v1535_v33 = vmov (!%p190_p8), 18   ;;  %v1536_v34 = vmov (!%p190_p8), 32  }
  0x20   : > { %1435 = vset.pattern.permute.xlu1 (!%p190_p8), %v1515_v13  ;;  %1433 = vset.pattern.permute.xlu0 (!%p190_p8), %v1516_v14  ;;  %v1537_v35 = vmov (!%p190_p8), 19   ;;  %v1538_v36 = vmov (!%p190_p8), 35   ;;  %v1539_v37 = vmov (!%p190_p8), 21   ;;  %v1540_v38 = vmov (!%p190_p8), 38  }
  0x21   : > { %328 = vperm.xlu1 (!%p190_p8), %1435, %v1616_v10   ;;  %282 = vperm.xlu0 (!%p190_p8), %1433, %v1616_v10   ;;  %v1541_v39 = vmov (!%p190_p8), 22   ;;  %v1542_v40 = vmov (!%p190_p8), 39   ;;  %v1543_v41 = vmov (!%p190_p8), 24   ;;  %v1544_v42 = vmov (!%p190_p8), 25  }
  0x22   : > { %v1545_v43 = vmov 27   ;;  %v1546_v44 = vmov 28   ;;  %v1547_v45 = vmov 30   ;;  %v1548_v46 = vmov 31   ;;  %s1814_s30 = smov (!%p240_p9, %s1306_s30), 3 }
  0x23   : > { %v1549_v47 = vmov 33   ;;  %v1550_v48 = vmov 34   ;;  %v1551_v49 = vmov 36   ;;  %v263_v50 = vlaneseq  ;;  %v256_v53 = vld [vmem:[%s1658_s29] ss:$8 sm:$0x3] }
  0x24   : > { %v1552_v51 = vmov 37   ;;  %v1309_v56 = vld [vmem:[%s1658_s29 + $0x2] ss:$8 sm:$0x3]  ;;  %s1307_s3 = sshll.u32 %s1814_s30, 3 }
  0x25   : > { %1436 = vset.pattern.permute.xlu1 %v1517_v15  ;;  %1437 = vset.pattern.permute.xlu0 %v1518_v16  ;;  %v264_v52 = vshrl.u32 %v263_v50, 7  ;;  %v1308_v59 = vld [vmem:[%s1658_s29 + $0x1] ss:$8 sm:$0x3]  ;;  %s245_s6 = scalar_lea.vmem %s1806_s2, %s1307_s3 }
  0x26   : > { %351 = vperm.xlu1 %1436, %v1616_v10   ;;  %374 = vperm.xlu0 %1437, %v1616_v10   ;;  %v1310_v63 = vld [vmem:[%s1658_s29 + $0x3] ss:$8 sm:$0x3]  ;;  %v1311_v6 = vld [vmem:[%s1658_s29 + $0x4] ss:$8 sm:$0x3] }
  0x27   : > { %v1661_v54 = vsub.s32 0, %v264_v52  ;;  %v1663_v55 = vsub.s32 1, %v264_v52  ;;  %v1312_v7 = vld [vmem:[%s1658_s29 + $0x5] ss:$8 sm:$0x3] }
  0x29   : > { %v266_v57 = vrot.slane %v256_v53, %v1661_v54  ;;  %v270_v58 = vrot.slane %v256_v53, %v1663_v55  ;;  %v312_v62 = vrot.slane %v1309_v56, %v1661_v54  ;;  %v316_v0 = vrot.slane %v1309_v56, %v1663_v55 }
  0x2a   : > { %1438 = vset.pattern.permute.xlu1 %v1519_v17  ;;  %1440 = vset.pattern.permute.xlu0 %v1520_v18  ;;  %v289_v2 = vrot.slane %v1308_v59, %v1661_v54  ;;  %v293_v3 = vrot.slane %v1308_v59, %v1663_v55  ;;  %v335_v5 = vrot.slane %v1310_v63, %v1661_v54 }
  0x2b   : > { %397 = vperm.xlu1 %1438, %v1616_v10   ;;  %443 = vperm.xlu0 %1440, %v1616_v10   ;;  %v358_v17 = vrot.slane %v1311_v6, %v1661_v54  ;;  %v362_v18 = vrot.slane %v1311_v6, %v1663_v55 }
  0x2f   : > { %1439 = vset.pattern.permute.xlu1 %v1521_v19  ;;  %1443 = vset.pattern.permute.xlu0 %v1522_v20  ;;  %v381_v19 = vrot.slane %v1312_v7, %v1661_v54  ;;  %v1313_v20 = vld [vmem:[%s1658_s29 + $0x6] ss:$8 sm:$0x3] }
  0x30   : > { %420 = vperm.xlu1 %1439, %v1616_v10   ;;  %512 = vperm.xlu0 %1443, %v1616_v10  }
  0x34   : > { %1441 = vset.pattern.permute.xlu1 %v1523_v21  ;;  %1446 = vset.pattern.permute.xlu0 %v1524_v22 }
  0x35   : > { %466 = vperm.xlu1 %1441, %v1616_v10   ;;  %581 = vperm.xlu0 %1446, %v1616_v10  }
  0x39   : > { %1442 = vset.pattern.permute.xlu1 %v1525_v23  ;;  %1449 = vset.pattern.permute.xlu0 %v1526_v24  ;;  %v385_v23 = vrot.slane %v1312_v7, %v1663_v55 }
  0x3a   : > { %489 = vperm.xlu1 %1442, %v1616_v10   ;;  %650 = vperm.xlu0 %1449, %v1616_v10  }
  0x3e   : > { %1444 = vset.pattern.permute.xlu1 %v1527_v25  ;;  %1452 = vset.pattern.permute.xlu0 %v1528_v26 }
  0x3f   : > { %535 = vperm.xlu1 %1444, %v1616_v10   ;;  %719 = vperm.xlu0 %1452, %v1616_v10  }
  0x43   : > { %1445 = vset.pattern.permute.xlu1 %v1529_v27  ;;  %1455 = vset.pattern.permute.xlu0 %v1530_v28 }
  0x44   : > { %558 = vperm.xlu1 %1445, %v1616_v10   ;;  %788 = vperm.xlu0 %1455, %v1616_v10  }
  0x48   : > { %1447 = vset.pattern.permute.xlu1 %v1531_v29  ;;  %1458 = vset.pattern.permute.xlu0 %v1532_v30 }
  0x49   : > { %604 = vperm.xlu1 %1447, %v1616_v10   ;;  %857 = vperm.xlu0 %1458, %v1616_v10  }
  0x4d   : > { %1448 = vset.pattern.permute.xlu1 %v1533_v31  ;;  %1461 = vset.pattern.permute.xlu0 %v1534_v32  ;;  %v404_v31 = vrot.slane %v1313_v20, %v1661_v54 }
  0x4e   : > { %627 = vperm.xlu1 %1448, %v1616_v10   ;;  %926 = vperm.xlu0 %1461, %v1616_v10  }
  0x52   : > { %1450 = vset.pattern.permute.xlu1 %v1535_v33  ;;  %1464 = vset.pattern.permute.xlu0 %v1536_v34 }
  0x53   : > { %673 = vperm.xlu1 %1450, %v1616_v10   ;;  %995 = vperm.xlu0 %1464, %v1616_v10  }
  0x57   : > { %1451 = vset.pattern.permute.xlu1 %v1537_v35  ;;  %1467 = vset.pattern.permute.xlu0 %v1538_v36 }
  0x58   : > { %696 = vperm.xlu1 %1451, %v1616_v10   ;;  %1064 = vperm.xlu0 %1467, %v1616_v10  }
  0x5c   : > { %1453 = vset.pattern.permute.xlu1 %v1539_v37  ;;  %1470 = vset.pattern.permute.xlu0 %v1540_v38 }
  0x5d   : > { %742 = vperm.xlu1 %1453, %v1616_v10   ;;  %1133 = vperm.xlu0 %1470, %v1616_v10  }
  0x61   : > { %1454 = vset.pattern.permute.xlu1 %v1541_v39  ;;  %1472 = vset.pattern.permute.xlu0 %v1542_v40  ;;  %v408_v39 = vrot.slane %v1313_v20, %v1663_v55 }
  0x62   : > { %765 = vperm.xlu1 %1454, %v1616_v10  }
  0x66   : > { %1456 = vset.pattern.permute.xlu1 %v1543_v41 }
  0x67   : > { %811 = vperm.xlu1 %1456, %v1616_v10  }
  0x6b   : > { %1457 = vset.pattern.permute.xlu1 %v1544_v42 }
  0x6c   : > { %834 = vperm.xlu1 %1457, %v1616_v10  }
  0x70   : > { %1459 = vset.pattern.permute.xlu1 %v1545_v43 }
  0x71   : > { %880 = vperm.xlu1 %1459, %v1616_v10  }
  0x75   : > { %1460 = vset.pattern.permute.xlu1 %v1546_v44 }
  0x76   : > { %903 = vperm.xlu1 %1460, %v1616_v10  }
  0x7a   : > { %1462 = vset.pattern.permute.xlu1 %v1547_v45 }
  0x7b   : > { %949 = vperm.xlu1 %1462, %v1616_v10  }
  0x7f   : > { %1463 = vset.pattern.permute.xlu1 %v1548_v46  ;;  %v1315_v46 = vld [vmem:[%s1658_s29 + $0x10] ss:$8 sm:$0x3] }
  0x80   : > { %972 = vperm.xlu1 %1463, %v1616_v10   ;;  %v450_v59 = vrot.slane %v1315_v46, %v1661_v54 }
  0x84   : > { %1465 = vset.pattern.permute.xlu1 %v1549_v47 }
  0x85   : > { %1018 = vperm.xlu1 %1465, %v1616_v10  }
  0x89   : > { %1466 = vset.pattern.permute.xlu1 %v1550_v48 }
  0x8a   : > { %1041 = vperm.xlu1 %1466, %v1616_v10  }
  0x8e   : > { %1468 = vset.pattern.permute.xlu1 %v1551_v49 }
  0x8f   : > { %1087 = vperm.xlu1 %1468, %v1616_v10  }
  0x93   : > { %1469 = vset.pattern.permute.xlu1 %v1552_v51 }
  0x94   : > { %1110 = vperm.xlu1 %1469, %v1616_v10  }
  0x98   : > { %1471 = vset.pattern.permute.xlu1 %v1542_v40  ;;  %v1314_v40 = vld [vmem:[%s1658_s29 + $0x7] ss:$8 sm:$0x3] }
  0x99   : > { %1156 = vperm.xlu1 %1471, %v1616_v10   ;;  %v339_v10 = vrot.slane %v1310_v63, %v1663_v55  ;;  %v427_v56 = vrot.slane %v1314_v40, %v1661_v54 }
  0x9b   : > { %v306_v60 = vpop.permute.xlu1 %305  ;;  %v260_v61 = vpop.permute.xlu0 %259 }
  0x9c   : > { %v273_v1 = vsub.f32 %v260_v61, %v266_v57  ;;  %v274_v4 = vsub.f32 %v260_v61, %v270_v58  ;;  %v319_v8 = vsub.f32 %v306_v60, %v312_v62  ;;  %v320_v12 = vsub.f32 %v306_v60, %v316_v0  ;;  %v1316_v62 = vld [vmem:[%s1658_s29 + $0x11] ss:$8 sm:$0x3] }
  0x9d   : > { %v431_v58 = vrot.slane %v1314_v40, %v1663_v55  ;;  %v454_v60 = vrot.slane %v1315_v46, %v1663_v55 }
  0x9e   : > { %v275_v13 = vand.u32 2147483647, %v273_v1  ;;  %v276_v16 = vand.u32 2147483647, %v274_v4  ;;  %v321_v26 = vand.u32 2147483647, %v319_v8  ;;  %v473_v8 = vrot.slane %v1316_v62, %v1661_v54 }
  0x9f   : > { %v322_v27 = vand.u32 2147483647, %v320_v12 }
  0xa0   : > { %v329_v9 = vpop.permute.xlu1 %328  ;;  %v283_v11 = vpop.permute.xlu0 %282 }
  0xa1   : > { %v296_v14 = vsub.f32 %v283_v11, %v289_v2  ;;  %v297_v15 = vsub.f32 %v283_v11, %v293_v3  ;;  %v342_v21 = vsub.f32 %v329_v9, %v335_v5  ;;  %v343_v24 = vsub.f32 %v329_v9, %v339_v10 }
  0xa2   : > { %v477_v9 = vrot.slane %v1316_v62, %v1663_v55 }
  0xa3   : > { %v298_v22 = vand.u32 2147483647, %v296_v14  ;;  %v299_v25 = vand.u32 2147483647, %v297_v15  ;;  %v344_v36 = vand.u32 2147483647, %v342_v21 }
  0xa4   : > { %v345_v41 = vand.u32 2147483647, %v343_v24  ;;  %v1317_v14 = vld [vmem:[%s1658_s29 + $0x12] ss:$8 sm:$0x3] }
  0xa5   : > { %v300_v28 = vadd.f32 %v298_v22, %v275_v13  ;;  %v352_v29 = vpop.permute.xlu1 %351  ;;  %v375_v30 = vpop.permute.xlu0 %374  ;;  %v301_v32 = vadd.f32 %v299_v25, %v276_v16  ;;  %v1318_v15 = vld [vmem:[%s1658_s29 + $0x13] ss:$8 sm:$0x3]  ;;  %v500_v24 = vrot.slane %v1317_v14, %v1663_v55 }
  0xa6   : > { %v365_v33 = vsub.f32 %v352_v29, %v358_v17  ;;  %v366_v34 = vsub.f32 %v352_v29, %v362_v18  ;;  %v388_v35 = vsub.f32 %v375_v30, %v381_v19  ;;  %v389_v38 = vsub.f32 %v375_v30, %v385_v23 }
  0xa7   : > { %v323_v37 = vadd.f32 %v321_v26, %v300_v28  ;;  %v324_v42 = vadd.f32 %v322_v27, %v301_v32  ;;  %v496_v23 = vrot.slane %v1317_v14, %v1661_v54  ;;  %v519_v25 = vrot.slane %v1318_v15, %v1661_v54  ;;  %v1319_v28 = vld [vmem:[%s1658_s29 + $0x14] ss:$8 sm:$0x3] }
  0xa8   : > { %v367_v43 = vand.u32 2147483647, %v365_v33  ;;  %v368_v44 = vand.u32 2147483647, %v366_v34  ;;  %v390_v48 = vand.u32 2147483647, %v388_v35  ;;  %v523_v26 = vrot.slane %v1318_v15, %v1663_v55 }
  0xa9   : > { %v346_v45 = vadd.f32 %v344_v36, %v323_v37  ;;  %v347_v47 = vadd.f32 %v345_v41, %v324_v42  ;;  %v391_v49 = vand.u32 2147483647, %v389_v38  ;;  %v542_v38 = vrot.slane %v1319_v28, %v1661_v54 }
  0xaa   : > { %v398_v50 = vpop.permute.xlu1 %397  ;;  %v444_v61 = vpop.permute.xlu0 %443 }
  0xab   : > { %v369_v51 = vadd.f32 %v367_v43, %v346_v45  ;;  %v411_v52 = vsub.f32 %v398_v50, %v404_v31  ;;  %v412_v53 = vsub.f32 %v398_v50, %v408_v39  ;;  %v370_v57 = vadd.f32 %v368_v44, %v347_v47  ;;  %v1320_v44 = vld [vmem:[%s1658_s29 + $0x15] ss:$8 sm:$0x3]  ;;  %v1321_v45 = vld [vmem:[%s1658_s29 + $0x16] ss:$8 sm:$0x3] }
  0xac   : > { %v457_v6 = vsub.f32 %v444_v61, %v450_v59  ;;  %v458_v7 = vsub.f32 %v444_v61, %v454_v60  ;;  %v546_v39 = vrot.slane %v1319_v28, %v1663_v55  ;;  %v1322_v60 = vld [vmem:[%s1658_s29 + $0x17] ss:$8 sm:$0x3] }
  0xad   : > { %v392_v63 = vadd.f32 %v390_v48, %v369_v51  ;;  %v393_v0 = vadd.f32 %v391_v49, %v370_v57  ;;  %v413_v1 = vand.u32 2147483647, %v411_v52  ;;  %v414_v2 = vand.u32 2147483647, %v412_v53 }
  0xae   : > { %v459_v18 = vand.u32 2147483647, %v457_v6  ;;  %v460_v19 = vand.u32 2147483647, %v458_v7  ;;  %v565_v53 = vrot.slane %v1320_v44, %v1661_v54  ;;  %v588_v57 = vrot.slane %v1321_v45, %v1661_v54 }
  0xaf   : > { %v421_v3 = vpop.permute.xlu1 %420  ;;  %v415_v10 = vadd.f32 %v413_v1, %v392_v63  ;;  %v416_v11 = vadd.f32 %v414_v2, %v393_v0  ;;  %v513_v27 = vpop.permute.xlu0 %512  ;;  %v611_v6 = vrot.slane %v1322_v60, %v1661_v54  ;;  %v615_v7 = vrot.slane %v1322_v60, %v1663_v55 }
  0xb0   : > { %v434_v4 = vsub.f32 %v421_v3, %v427_v56  ;;  %v435_v5 = vsub.f32 %v421_v3, %v431_v58  ;;  %v526_v36 = vsub.f32 %v513_v27, %v519_v25  ;;  %v527_v37 = vsub.f32 %v513_v27, %v523_v26  ;;  %v1325_v26 = vld [vmem:[%s1658_s29 + $0x22] ss:$8 sm:$0x3] }
  0xb1   : > { %v569_v56 = vrot.slane %v1320_v44, %v1663_v55  ;;  %v592_v58 = vrot.slane %v1321_v45, %v1663_v55 }
  0xb2   : > { %v436_v12 = vand.u32 2147483647, %v434_v4  ;;  %v437_v13 = vand.u32 2147483647, %v435_v5  ;;  %v528_v48 = vand.u32 2147483647, %v526_v36  ;;  %v680_v36 = vrot.slane %v1325_v26, %v1661_v54 }
  0xb3   : > { %v529_v49 = vand.u32 2147483647, %v527_v37  ;;  %v684_v37 = vrot.slane %v1325_v26, %v1663_v55 }
  0xb4   : > { %v438_v16 = vadd.f32 %v436_v12, %v415_v10  ;;  %v439_v17 = vadd.f32 %v437_v13, %v416_v11  ;;  %v467_v20 = vpop.permute.xlu1 %466  ;;  %v582_v59 = vpop.permute.xlu0 %581  ;;  %v1323_v12 = vld [vmem:[%s1658_s29 + $0x20] ss:$8 sm:$0x3]  ;;  %v1324_v13 = vld [vmem:[%s1658_s29 + $0x21] ss:$8 sm:$0x3] }
  0xb5   : > { %v480_v21 = vsub.f32 %v467_v20, %v473_v8  ;;  %v481_v22 = vsub.f32 %v467_v20, %v477_v9  ;;  %v595_v4 = vsub.f32 %v582_v59, %v588_v57  ;;  %v596_v5 = vsub.f32 %v582_v59, %v592_v58  ;;  %v1328_v58 = vld [vmem:[%s1658_s29 + $0x25] ss:$8 sm:$0x3] }
  0xb6   : > { %v461_v29 = vadd.f32 %v459_v18, %v438_v16  ;;  %v462_v30 = vadd.f32 %v460_v19, %v439_v17 }
  0xb7   : > { %v482_v31 = vand.u32 2147483647, %v480_v21  ;;  %v483_v32 = vand.u32 2147483647, %v481_v22  ;;  %v597_v16 = vand.u32 2147483647, %v595_v4  ;;  %v634_v21 = vrot.slane %v1323_v12, %v1661_v54 }
  0xb8   : > { %v598_v17 = vand.u32 2147483647, %v596_v5  ;;  %v638_v22 = vrot.slane %v1323_v12, %v1663_v55  ;;  %v749_v4 = vrot.slane %v1328_v58, %v1661_v54  ;;  %v753_v5 = vrot.slane %v1328_v58, %v1663_v55 }
  0xb9   : > { %v490_v33 = vpop.permute.xlu1 %489  ;;  %v484_v40 = vadd.f32 %v482_v31, %v461_v29  ;;  %v485_v41 = vadd.f32 %v483_v32, %v462_v30  ;;  %v651_v25 = vpop.permute.xlu0 %650 }
  0xba   : > { %v503_v34 = vsub.f32 %v490_v33, %v496_v23  ;;  %v504_v35 = vsub.f32 %v490_v33, %v500_v24  ;;  %v657_v23 = vrot.slane %v1324_v13, %v1661_v54  ;;  %v661_v24 = vrot.slane %v1324_v13, %v1663_v55 }
  0xbc   : > { %v505_v42 = vand.u32 2147483647, %v503_v34  ;;  %v506_v43 = vand.u32 2147483647, %v504_v35  ;;  %v664_v34 = vsub.f32 %v651_v25, %v657_v23  ;;  %v665_v35 = vsub.f32 %v651_v25, %v661_v24 }
  0xbd   : > { %v1331_v24 = vld [vmem:[%s1658_s29 + $0x30] ss:$8 sm:$0x3] }
  0xbe   : > { %v507_v46 = vadd.f32 %v505_v42, %v484_v40  ;;  %v508_v47 = vadd.f32 %v506_v43, %v485_v41  ;;  %v536_v50 = vpop.permute.xlu1 %535  ;;  %v1326_v42 = vld [vmem:[%s1658_s29 + $0x23] ss:$8 sm:$0x3]  ;;  %v1327_v43 = vld [vmem:[%s1658_s29 + $0x24] ss:$8 sm:$0x3]  ;;  %v720_v57 = vpop.permute.xlu0 %719 }
  0xbf   : > { %v549_v51 = vsub.f32 %v536_v50, %v542_v38  ;;  %v550_v52 = vsub.f32 %v536_v50, %v546_v39 }
  0xc0   : > { %v530_v61 = vadd.f32 %v528_v48, %v507_v46  ;;  %v531_v62 = vadd.f32 %v529_v49, %v508_v47  ;;  %v666_v46 = vand.u32 2147483647, %v664_v34  ;;  %v667_v47 = vand.u32 2147483647, %v665_v35 }
  0xc1   : > { %v551_v63 = vand.u32 2147483647, %v549_v51  ;;  %v552_v0 = vand.u32 2147483647, %v550_v52  ;;  %v703_v51 = vrot.slane %v1326_v42, %v1661_v54  ;;  %v707_v52 = vrot.slane %v1326_v42, %v1663_v55 }
  0xc2   : > { %v818_v34 = vrot.slane %v1331_v24, %v1661_v54  ;;  %v822_v35 = vrot.slane %v1331_v24, %v1663_v55 }
  0xc3   : > { %v559_v1 = vpop.permute.xlu1 %558  ;;  %v553_v8 = vadd.f32 %v551_v63, %v530_v61  ;;  %v554_v9 = vadd.f32 %v552_v0, %v531_v62  ;;  %v789_v23 = vpop.permute.xlu0 %788 }
  0xc4   : > { %v572_v2 = vsub.f32 %v559_v1, %v565_v53  ;;  %v573_v3 = vsub.f32 %v559_v1, %v569_v56  ;;  %v726_v53 = vrot.slane %v1327_v43, %v1661_v54  ;;  %v730_v56 = vrot.slane %v1327_v43, %v1663_v55 }
  0xc6   : > { %v574_v10 = vand.u32 2147483647, %v572_v2  ;;  %v575_v11 = vand.u32 2147483647, %v573_v3  ;;  %v733_v2 = vsub.f32 %v720_v57, %v726_v53  ;;  %v734_v3 = vsub.f32 %v720_v57, %v730_v56 }
  0xc7   : > { %v1334_v56 = vld [vmem:[%s1658_s29 + $0x33] ss:$8 sm:$0x3] }
  0xc8   : > { %v576_v14 = vadd.f32 %v574_v10, %v553_v8  ;;  %v577_v15 = vadd.f32 %v575_v11, %v554_v9  ;;  %v605_v18 = vpop.permute.xlu1 %604  ;;  %v1329_v10 = vld [vmem:[%s1658_s29 + $0x26] ss:$8 sm:$0x3]  ;;  %v1330_v11 = vld [vmem:[%s1658_s29 + $0x27] ss:$8 sm:$0x3]  ;;  %v858_v53 = vpop.permute.xlu0 %857 }
  0xc9   : > { %v618_v19 = vsub.f32 %v605_v18, %v611_v6  ;;  %v619_v20 = vsub.f32 %v605_v18, %v615_v7 }
  0xca   : > { %v599_v27 = vadd.f32 %v597_v16, %v576_v14  ;;  %v600_v28 = vadd.f32 %v598_v17, %v577_v15  ;;  %v735_v14 = vand.u32 2147483647, %v733_v2  ;;  %v736_v15 = vand.u32 2147483647, %v734_v3 }
  0xcb   : > { %v620_v29 = vand.u32 2147483647, %v618_v19  ;;  %v621_v30 = vand.u32 2147483647, %v619_v20  ;;  %v772_v19 = vrot.slane %v1329_v10, %v1661_v54  ;;  %v776_v20 = vrot.slane %v1329_v10, %v1663_v55 }
  0xcc   : > { %v887_v2 = vrot.slane %v1334_v56, %v1661_v54  ;;  %v891_v3 = vrot.slane %v1334_v56, %v1663_v55 }
  0xcd   : > { %v628_v31 = vpop.permute.xlu1 %627  ;;  %v622_v38 = vadd.f32 %v620_v29, %v599_v27  ;;  %v623_v39 = vadd.f32 %v621_v30, %v600_v28 }
  0xce   : > { %v641_v32 = vsub.f32 %v628_v31, %v634_v21  ;;  %v642_v33 = vsub.f32 %v628_v31, %v638_v22  ;;  %v795_v21 = vrot.slane %v1330_v11, %v1661_v54  ;;  %v799_v22 = vrot.slane %v1330_v11, %v1663_v55 }
  0xd0   : > { %v643_v40 = vand.u32 2147483647, %v641_v32  ;;  %v644_v41 = vand.u32 2147483647, %v642_v33  ;;  %v802_v32 = vsub.f32 %v789_v23, %v795_v21  ;;  %v803_v33 = vsub.f32 %v789_v23, %v799_v22  ;;  %v927_v21 = vpop.permute.xlu0 %926 }
  0xd1   : > { %v1337_v22 = vld [vmem:[%s1658_s29 + $0x36] ss:$8 sm:$0x3] }
  0xd2   : > { %v645_v44 = vadd.f32 %v643_v40, %v622_v38  ;;  %v646_v45 = vadd.f32 %v644_v41, %v623_v39  ;;  %v674_v48 = vpop.permute.xlu1 %673  ;;  %v1332_v40 = vld [vmem:[%s1658_s29 + $0x31] ss:$8 sm:$0x3]  ;;  %v1333_v41 = vld [vmem:[%s1658_s29 + $0x32] ss:$8 sm:$0x3] }
  0xd3   : > { %v687_v49 = vsub.f32 %v674_v48, %v680_v36  ;;  %v688_v50 = vsub.f32 %v674_v48, %v684_v37 }
  0xd4   : > { %v668_v59 = vadd.f32 %v666_v46, %v645_v44  ;;  %v669_v60 = vadd.f32 %v667_v47, %v646_v45  ;;  %v804_v44 = vand.u32 2147483647, %v802_v32  ;;  %v805_v45 = vand.u32 2147483647, %v803_v33 }
  0xd5   : > { %v689_v61 = vand.u32 2147483647, %v687_v49  ;;  %v690_v62 = vand.u32 2147483647, %v688_v50  ;;  %v841_v49 = vrot.slane %v1332_v40, %v1661_v54  ;;  %v845_v50 = vrot.slane %v1332_v40, %v1663_v55 }
  0xd6   : > { %v956_v32 = vrot.slane %v1337_v22, %v1661_v54  ;;  %v960_v33 = vrot.slane %v1337_v22, %v1663_v55 }
  0xd7   : > { %v697_v63 = vpop.permute.xlu1 %696  ;;  %v691_v6 = vadd.f32 %v689_v61, %v668_v59  ;;  %v692_v7 = vadd.f32 %v690_v62, %v669_v60 }
  0xd8   : > { %v710_v0 = vsub.f32 %v697_v63, %v703_v51  ;;  %v711_v1 = vsub.f32 %v697_v63, %v707_v52  ;;  %v864_v51 = vrot.slane %v1333_v41, %v1661_v54  ;;  %v868_v52 = vrot.slane %v1333_v41, %v1663_v55 }
  0xda   : > { %v712_v8 = vand.u32 2147483647, %v710_v0  ;;  %v713_v9 = vand.u32 2147483647, %v711_v1  ;;  %v871_v0 = vsub.f32 %v858_v53, %v864_v51  ;;  %v872_v1 = vsub.f32 %v858_v53, %v868_v52  ;;  %v996_v51 = vpop.permute.xlu0 %995 }
  0xdb   : > { %v1340_v52 = vld [vmem:[%s1658_s29 + $0x41] ss:$8 sm:$0x3] }
  0xdc   : > { %v714_v12 = vadd.f32 %v712_v8, %v691_v6  ;;  %v715_v13 = vadd.f32 %v713_v9, %v692_v7  ;;  %v743_v16 = vpop.permute.xlu1 %742  ;;  %v1335_v8 = vld [vmem:[%s1658_s29 + $0x34] ss:$8 sm:$0x3]  ;;  %v1336_v9 = vld [vmem:[%s1658_s29 + $0x35] ss:$8 sm:$0x3] }
  0xdd   : > { %v756_v17 = vsub.f32 %v743_v16, %v749_v4  ;;  %v757_v18 = vsub.f32 %v743_v16, %v753_v5 }
  0xde   : > { %v737_v25 = vadd.f32 %v735_v14, %v714_v12  ;;  %v738_v26 = vadd.f32 %v736_v15, %v715_v13  ;;  %v873_v12 = vand.u32 2147483647, %v871_v0  ;;  %v874_v13 = vand.u32 2147483647, %v872_v1 }
  0xdf   : > { %v758_v27 = vand.u32 2147483647, %v756_v17  ;;  %v759_v28 = vand.u32 2147483647, %v757_v18  ;;  %v910_v17 = vrot.slane %v1335_v8, %v1661_v54  ;;  %v914_v18 = vrot.slane %v1335_v8, %v1663_v55 }
  0xe0   : > { %v1025_v0 = vrot.slane %v1340_v52, %v1661_v54  ;;  %v1029_v1 = vrot.slane %v1340_v52, %v1663_v55  ;;  %v1346_v52 = vld [vmem:[%s1658_s29 + $0x47] ss:$8 sm:$0x3] }
  0xe1   : > { %v766_v29 = vpop.permute.xlu1 %765  ;;  %v760_v36 = vadd.f32 %v758_v27, %v737_v25  ;;  %v761_v37 = vadd.f32 %v759_v28, %v738_v26 }
  0xe2   : > { %v779_v30 = vsub.f32 %v766_v29, %v772_v19  ;;  %v780_v31 = vsub.f32 %v766_v29, %v776_v20  ;;  %v933_v19 = vrot.slane %v1336_v9, %v1661_v54  ;;  %v937_v20 = vrot.slane %v1336_v9, %v1663_v55 }
  0xe4   : > { %v781_v38 = vand.u32 2147483647, %v779_v30  ;;  %v782_v39 = vand.u32 2147483647, %v780_v31  ;;  %v940_v30 = vsub.f32 %v927_v21, %v933_v19  ;;  %v941_v31 = vsub.f32 %v927_v21, %v937_v20  ;;  %v1065_v19 = vpop.permute.xlu0 %1064 }
  0xe5   : > { %v1343_v20 = vld [vmem:[%s1658_s29 + $0x44] ss:$8 sm:$0x3] }
  0xe6   : > { %v783_v42 = vadd.f32 %v781_v38, %v760_v36  ;;  %v784_v43 = vadd.f32 %v782_v39, %v761_v37  ;;  %v812_v46 = vpop.permute.xlu1 %811  ;;  %v1338_v38 = vld [vmem:[%s1658_s29 + $0x37] ss:$8 sm:$0x3]  ;;  %v1339_v39 = vld [vmem:[%s1658_s29 + $0x40] ss:$8 sm:$0x3] }
  0xe7   : > { %v825_v47 = vsub.f32 %v812_v46, %v818_v34  ;;  %v826_v48 = vsub.f32 %v812_v46, %v822_v35 }
  0xe8   : > { %v806_v57 = vadd.f32 %v804_v44, %v783_v42  ;;  %v807_v58 = vadd.f32 %v805_v45, %v784_v43  ;;  %v942_v42 = vand.u32 2147483647, %v940_v30  ;;  %v943_v43 = vand.u32 2147483647, %v941_v31 }
  0xe9   : > { %v827_v59 = vand.u32 2147483647, %v825_v47  ;;  %v828_v60 = vand.u32 2147483647, %v826_v48  ;;  %v979_v47 = vrot.slane %v1338_v38, %v1661_v54  ;;  %v983_v48 = vrot.slane %v1338_v38, %v1663_v55 }
  0xea   : > { %v1345_v30 = vld [vmem:[%s1658_s29 + $0x46] ss:$8 sm:$0x3]  ;;  %v1094_v31 = vrot.slane %v1343_v20, %v1661_v54 }
  0xeb   : > { %v835_v61 = vpop.permute.xlu1 %834  ;;  %v829_v4 = vadd.f32 %v827_v59, %v806_v57  ;;  %v830_v5 = vadd.f32 %v828_v60, %v807_v58  ;;  %v1140_v38 = vrot.slane %v1345_v30, %v1661_v54 }
  0xec   : > { %v848_v62 = vsub.f32 %v835_v61, %v841_v49  ;;  %v849_v63 = vsub.f32 %v835_v61, %v845_v50  ;;  %v1002_v49 = vrot.slane %v1339_v39, %v1661_v54  ;;  %v1006_v50 = vrot.slane %v1339_v39, %v1663_v55 }
  0xed   : > { %v1144_v39 = vrot.slane %v1345_v30, %v1663_v55 }
  0xee   : > { %v850_v6 = vand.u32 2147483647, %v848_v62  ;;  %v851_v7 = vand.u32 2147483647, %v849_v63  ;;  %v1009_v62 = vsub.f32 %v996_v51, %v1002_v49  ;;  %v1010_v63 = vsub.f32 %v996_v51, %v1006_v50 }
  0xf0   : > { %v852_v10 = vadd.f32 %v850_v6, %v829_v4  ;;  %v853_v11 = vadd.f32 %v851_v7, %v830_v5  ;;  %v881_v14 = vpop.permute.xlu1 %880  ;;  %v1341_v6 = vld [vmem:[%s1658_s29 + $0x42] ss:$8 sm:$0x3]  ;;  %v1342_v7 = vld [vmem:[%s1658_s29 + $0x43] ss:$8 sm:$0x3] }
  0xf1   : > { %v894_v15 = vsub.f32 %v881_v14, %v887_v2  ;;  %v895_v16 = vsub.f32 %v881_v14, %v891_v3 }
  0xf2   : > { %v875_v23 = vadd.f32 %v873_v12, %v852_v10  ;;  %v876_v24 = vadd.f32 %v874_v13, %v853_v11  ;;  %v1011_v10 = vand.u32 2147483647, %v1009_v62  ;;  %v1012_v11 = vand.u32 2147483647, %v1010_v63 }
  0xf3   : > { %v896_v25 = vand.u32 2147483647, %v894_v15  ;;  %v897_v26 = vand.u32 2147483647, %v895_v16  ;;  %v1048_v15 = vrot.slane %v1341_v6, %v1661_v54  ;;  %v1052_v16 = vrot.slane %v1341_v6, %v1663_v55 }
  0xf5   : > { %v904_v27 = vpop.permute.xlu1 %903  ;;  %v898_v34 = vadd.f32 %v896_v25, %v875_v23  ;;  %v899_v35 = vadd.f32 %v897_v26, %v876_v24 }
  0xf6   : > { %v917_v28 = vsub.f32 %v904_v27, %v910_v17  ;;  %v918_v29 = vsub.f32 %v904_v27, %v914_v18  ;;  %v1071_v17 = vrot.slane %v1342_v7, %v1661_v54  ;;  %v1075_v18 = vrot.slane %v1342_v7, %v1663_v55 }
  0xf8   : > { %v919_v36 = vand.u32 2147483647, %v917_v28  ;;  %v920_v37 = vand.u32 2147483647, %v918_v29  ;;  %v1078_v28 = vsub.f32 %v1065_v19, %v1071_v17  ;;  %v1079_v29 = vsub.f32 %v1065_v19, %v1075_v18 }
  0xfa   : > { %v921_v40 = vadd.f32 %v919_v36, %v898_v34  ;;  %v922_v41 = vadd.f32 %v920_v37, %v899_v35  ;;  %v950_v44 = vpop.permute.xlu1 %949  ;;  %v1344_v37 = vld [vmem:[%s1658_s29 + $0x45] ss:$8 sm:$0x3] }
  0xfb   : > { %v963_v45 = vsub.f32 %v950_v44, %v956_v32  ;;  %v964_v46 = vsub.f32 %v950_v44, %v960_v33  ;;  %v1098_v32 = vrot.slane %v1343_v20, %v1663_v55  ;;  %v1121_v49 = vrot.slane %v1344_v37, %v1663_v55 }
  0xfc   : > { %v944_v53 = vadd.f32 %v942_v42, %v921_v40  ;;  %v945_v56 = vadd.f32 %v943_v43, %v922_v41  ;;  %v1080_v42 = vand.u32 2147483647, %v1078_v28  ;;  %v1081_v43 = vand.u32 2147483647, %v1079_v29 }
  0xfd   : > { %v965_v57 = vand.u32 2147483647, %v963_v45  ;;  %v966_v58 = vand.u32 2147483647, %v964_v46  ;;  %v1134_v45 = vpop.permute.xlu0 %1133 }
  0xfe   : > { %v1147_v50 = vsub.f32 %v1134_v45, %v1140_v38  ;;  %v1148_v51 = vsub.f32 %v1134_v45, %v1144_v39 }
  0xff   : > { %v973_v59 = vpop.permute.xlu1 %972  ;;  %v967_v2 = vadd.f32 %v965_v57, %v944_v53  ;;  %v968_v3 = vadd.f32 %v966_v58, %v945_v56 }
 0x100   : > { %v986_v60 = vsub.f32 %v973_v59, %v979_v47  ;;  %v987_v61 = vsub.f32 %v973_v59, %v983_v48  ;;  %v1117_v48 = vrot.slane %v1344_v37, %v1661_v54  ;;  %v1149_v62 = vand.u32 2147483647, %v1147_v50 }
 0x101   : > { %v1150_v63 = vand.u32 2147483647, %v1148_v51 }
 0x102   : > { %v988_v4 = vand.u32 2147483647, %v986_v60  ;;  %v989_v5 = vand.u32 2147483647, %v987_v61 }
 0x104   : > { %v990_v8 = vadd.f32 %v988_v4, %v967_v2  ;;  %v991_v9 = vadd.f32 %v989_v5, %v968_v3  ;;  %v1019_v12 = vpop.permute.xlu1 %1018 }
 0x105   : > { %v1032_v13 = vsub.f32 %v1019_v12, %v1025_v0  ;;  %v1033_v14 = vsub.f32 %v1019_v12, %v1029_v1  ;;  %v1163_v0 = vrot.slane %v1346_v52, %v1661_v54  ;;  %v1167_v1 = vrot.slane %v1346_v52, %v1663_v55 }
 0x106   : > { %v1013_v21 = vadd.f32 %v1011_v10, %v990_v8  ;;  %v1014_v22 = vadd.f32 %v1012_v11, %v991_v9 }
 0x107   : > { %v1034_v23 = vand.u32 2147483647, %v1032_v13  ;;  %v1035_v24 = vand.u32 2147483647, %v1033_v14 }
 0x109   : > { %v1042_v25 = vpop.permute.xlu1 %1041  ;;  %v1036_v33 = vadd.f32 %v1034_v23, %v1013_v21  ;;  %v1037_v34 = vadd.f32 %v1035_v24, %v1014_v22 }
 0x10a   : > { %v1055_v26 = vsub.f32 %v1042_v25, %v1048_v15  ;;  %v1056_v27 = vsub.f32 %v1042_v25, %v1052_v16 }
 0x10c   : > { %v1057_v35 = vand.u32 2147483647, %v1055_v26  ;;  %v1058_v36 = vand.u32 2147483647, %v1056_v27 }
 0x10e   : > { %v1059_v40 = vadd.f32 %v1057_v35, %v1036_v33  ;;  %v1060_v41 = vadd.f32 %v1058_v36, %v1037_v34  ;;  %v1088_v44 = vpop.permute.xlu1 %1087 }
 0x10f   : > { %v1101_v46 = vsub.f32 %v1088_v44, %v1094_v31  ;;  %v1102_v47 = vsub.f32 %v1088_v44, %v1098_v32 }
 0x110   : > { %v1082_v53 = vadd.f32 %v1080_v42, %v1059_v40  ;;  %v1083_v56 = vadd.f32 %v1081_v43, %v1060_v41 }
 0x111   : > { %v1103_v57 = vand.u32 2147483647, %v1101_v46  ;;  %v1104_v58 = vand.u32 2147483647, %v1102_v47 }
 0x113   : > { %v1111_v59 = vpop.permute.xlu1 %1110  ;;  %v1105_v2 = vadd.f32 %v1103_v57, %v1082_v53  ;;  %v1106_v3 = vadd.f32 %v1104_v58, %v1083_v56 }
 0x114   : > { %v1124_v60 = vsub.f32 %v1111_v59, %v1117_v48  ;;  %v1125_v61 = vsub.f32 %v1111_v59, %v1121_v49 }
 0x116   : > { %v1126_v4 = vand.u32 2147483647, %v1124_v60  ;;  %v1127_v5 = vand.u32 2147483647, %v1125_v61 }
 0x118   : > { %v1128_v6 = vadd.f32 %v1126_v4, %v1105_v2  ;;  %v1129_v7 = vadd.f32 %v1127_v5, %v1106_v3  ;;  %v1157_v8 = vpop.permute.xlu1 %1156 }
 0x119   : > { %v1170_v9 = vsub.f32 %v1157_v8, %v1163_v0  ;;  %v1171_v10 = vsub.f32 %v1157_v8, %v1167_v1 }
 0x11a   : > { %v1151_v11 = vadd.f32 %v1149_v62, %v1128_v6  ;;  %v1152_v12 = vadd.f32 %v1150_v63, %v1129_v7 }
 0x11b   : > { %v1172_v13 = vand.u32 2147483647, %v1170_v9  ;;  %v1173_v14 = vand.u32 2147483647, %v1171_v10 }
 0x11d   : > { %v1174_v15 = vadd.f32 %v1172_v13, %v1151_v11  ;;  %v1175_v16 = vadd.f32 %v1173_v14, %v1152_v12 }
 0x11f   : > { %v1183_v54 = vsub.f32 0.0, %v1174_v15  ;;  %v1184_v55 = vsub.f32 0.0, %v1175_v16 }
 0x121   : > { %1185 = vst [vmem:[%s245_s6] sm:$0xff] %v1183_v54  ;;  %1186 = vst [vmem:[%s245_s6 + $0x8] sm:$0xff] %v1184_v55 }
 0x122 PF: > { %s12_s13 = sadd.s32 1, %s1511_s13   ;;  %s1807_s9 = smov %s1499_s10 }
 0x123   : > { %p9_p10 = scmp.ge.s32.totalorder %s12_s13, 4   ;;  %s1808_s10 = smov %s1603_s17 }
 0x124   : > { %s1809_s11 = smov %s1507_s12  ;;  %s1810_s12 = smov %s1812_s14 }
 0x125   :  { %11 = sbr.rel (!%p9_p10) target bundleno = 3 (0x3), region = 136 }

</bundles_post_ra>
